<compile_context>
chip_gen: v6e
topology: v6e:2x2x1
jax: 0.10.0
libtpu: 0.0.40
codegen_flags: <defaults>
</compile_context>

<pallas_src>
import functools

import jax
import jax.numpy as jnp
from jax import lax
from jax.experimental import pallas as pl
from jax.experimental.pallas import tpu as pltpu


def _ls_ce_kernel(logit_ref, target_ref, out_ref, m_ref, s_ref, wsum_ref, *,
                  smoothing, n_cols, block_rows, block_cols, mask_cols):
    """One (row-tile, class-tile) step of label-smoothing CE.

    logit_ref : (TN, TC) storage dtype  (VMEM block)
    target_ref: (TN, 1)  int32          (VMEM block, resident across class axis)
    out_ref   : (TN, 1)  f32            (VMEM block, resident across class axis)
    m_ref/s_ref/wsum_ref : (TN, 1) f32  (VMEM scratch: running max / sum(exp) /
                                         weighted sum for the online logsumexp)
    """
    confidence = 1.0 - smoothing
    smooth_w = smoothing / n_cols
    j = pl.program_id(1)

    @pl.when(j == 0)
    def _init():
        m_ref[...] = jnp.full((block_rows, 1), -jnp.inf, dtype=jnp.float32)
        s_ref[...] = jnp.zeros((block_rows, 1), dtype=jnp.float32)
        wsum_ref[...] = jnp.zeros((block_rows, 1), dtype=jnp.float32)

    x = logit_ref[...]                                   # (TN, TC) storage dtype
    t = target_ref[...]                                  # (TN, 1)  int32

    # Global class index of each lane in this class tile.
    col = (lax.broadcasted_iota(jnp.int32, (block_rows, block_cols), 1)
           + j * block_cols)

    if mask_cols:
        valid = col < n_cols
        x_for_max = jnp.where(valid, x, jnp.array(-jnp.inf, dtype=x.dtype))
    else:
        x_for_max = x

    # Row max on the storage dtype (exact for bf16); upcast only the scalar row
    # statistics and the per-vreg expressions below.
    block_max = jnp.max(x_for_max, axis=-1, keepdims=True).astype(jnp.float32)
    m_prev = m_ref[...]
    m_new = jnp.maximum(m_prev, block_max)

    xf = x.astype(jnp.float32)
    e = jnp.exp(xf - m_new)                              # (TN, TC)

    # Fused weighted reduction: w = smoothing/C + confidence * onehot(target).
    w = jnp.where(col == t, confidence + smooth_w, smooth_w)
    wx = w * xf
    if mask_cols:
        # Selects (not multiplies) so garbage in padded columns is discarded.
        e = jnp.where(valid, e, 0.0)
        wx = jnp.where(valid, wx, 0.0)

    alpha = jnp.exp(m_prev - m_new)                      # online-logsumexp rescale
    s_ref[...] = s_ref[...] * alpha + jnp.sum(e, axis=-1, keepdims=True)
    wsum_ref[...] = wsum_ref[...] + jnp.sum(wx, axis=-1, keepdims=True)
    m_ref[...] = m_new

    @pl.when(j == pl.num_programs(1) - 1)
    def _finalize():
        lse = m_ref[...] + jnp.log(s_ref[...])
        # per_row = conf*(lse - x_t) + smooth*(lse - mean(x)) = lse - sum(w*x)
        out_ref[...] = lse - wsum_ref[...]


def _choose_block_cols(c, block_cols=None):
    """Class tile: full C when small, else a lane-dense (x128) divisor-ish tile."""
    if block_cols is not None:
        return int(block_cols)
    cap = 2048
    if c <= cap:
        return c
    for bc in range(cap, 127, -128):
        if c % bc == 0:
            return bc
    return cap  # ragged last class tile; handled via column masking


def _choose_block_rows(n, block_cols, itemsize, block_rows=None):
    """Row tile budgeted on the f32 working set; multiple of the sublane pack."""
    if block_rows is not None:
        return int(block_rows)
    pack = max(8, 32 // max(1, itemsize))    # 8 (f32), 16 (bf16), 32 (int8/fp8)
    if n <= pack:
        return n
    # f32 temps (x, exp, weights, iota) + 2x double-buffered storage-dtype rows.
    bytes_per_row = block_cols * (4 * 4 + 2 * itemsize) + 64
    budget = 8 << 20                          # ~8 MiB live working set
    tn = budget // max(1, bytes_per_row)
    tn = max(pack, min(tn, 1024, n))
    return (tn // pack) * pack


def label_smoothing_cross_entropy(logit, target, smoothing=0.1,
                                  block_rows=None, block_cols=None):
    """logit: [N, C] float (any storage dtype), target: [N] int -> f32 scalar."""
    assert smoothing < 1.0
    n, c = logit.shape
    itemsize = int(jnp.dtype(logit.dtype).itemsize)

    bc = _choose_block_cols(c, block_cols)
    br = _choose_block_rows(n, bc, itemsize, block_rows)
    num_row_tiles = pl.cdiv(n, br)
    num_class_tiles = pl.cdiv(c, bc)
    mask_cols = (c % bc) != 0

    target2d = target.astype(jnp.int32).reshape(n, 1)

    kernel = functools.partial(
        _ls_ce_kernel,
        smoothing=float(smoothing),
        n_cols=int(c),
        block_rows=int(br),
        block_cols=int(bc),
        mask_cols=bool(mask_cols),
    )

    # VMEM budget: double-buffered inputs + output + scratch + f32 temps.
    in_bytes = 2 * br * (bc * itemsize + 4)
    out_bytes = 2 * br * 4
    scratch_bytes = 3 * br * 4
    work_bytes = 4 * br * bc * 4
    vmem_limit = int(min(32 << 20,
                         max(16 << 20,
                             2 * (in_bytes + out_bytes + scratch_bytes
                                  + work_bytes))))

    cost = pl.CostEstimate(
        flops=int(8 * n * c),
        transcendentals=int(n * c + n),
        bytes_accessed=int(n * c * itemsize + n * 4 + n * 4),
    )

    per_row = pl.pallas_call(
        kernel,
        out_shape=jax.ShapeDtypeStruct((n, 1), jnp.float32),
        grid=(num_row_tiles, num_class_tiles),
        in_specs=[
            pl.BlockSpec((br, bc), lambda i, j: (i, j)),
            pl.BlockSpec((br, 1), lambda i, j: (i, 0)),
        ],
        out_specs=pl.BlockSpec((br, 1), lambda i, j: (i, 0)),
        scratch_shapes=[pltpu.VMEM((br, 1), jnp.float32)] * 3,
        compiler_params=pltpu.CompilerParams(
            dimension_semantics=("parallel", "arbitrary"),
            vmem_limit_bytes=vmem_limit,
        ),
        cost_estimate=cost,
    )(logit, target2d)

    # Tiny XLA reduce over exactly N per-row losses (also avoids long serial
    # f32 accumulation inside the kernel).
    return jnp.mean(per_row)


def _reference(logit, target, smoothing=0.1):
    confidence = 1.0 - smoothing
    logprobs = jax.nn.log_softmax(logit.astype(jnp.float32), axis=-1)
    nll = -jnp.take_along_axis(logprobs, target[:, None].astype(jnp.int32),
                               axis=-1)[:, 0]
    smooth = -jnp.mean(logprobs, axis=-1)
    return jnp.mean(confidence * nll + smoothing * smooth)


if __name__ == "__main__":
    key = jax.random.PRNGKey(0)
    k1, k2, k3, k4 = jax.random.split(key, 4)

    # Case 1: f32, N=12 not a multiple of the 8-row tile -> remainder row tile,
    # single class tile (C == block_cols).
    N, C = 12, 32
    logit = jax.random.normal(k1, (N, C), dtype=jnp.float32)
    target = jax.random.randint(k2, (N,), 0, C, dtype=jnp.int32)
    loss = jax.block_until_ready(
        label_smoothing_cross_entropy(logit, target, smoothing=0.1))
    ref = _reference(logit, target, smoothing=0.1)
    assert jnp.allclose(loss, ref, atol=1e-5, rtol=1e-5), (loss, ref)

    # Case 2: bf16 logits, class axis split into 3 tiles -> online logsumexp.
    N2, C2 = 24, 384
    logit2 = jax.random.normal(k3, (N2, C2), dtype=jnp.float32) * 3.0
    target2 = jax.random.randint(k4, (N2,), 0, C2, dtype=jnp.int32)
    logit2_bf16 = logit2.astype(jnp.bfloat16)
    loss2 = jax.block_until_ready(
        label_smoothing_cross_entropy(logit2_bf16, target2, smoothing=0.1,
                                      block_rows=8, block_cols=128))
    ref2 = _reference(logit2_bf16.astype(jnp.float32), target2, smoothing=0.1)
    assert jnp.allclose(loss2, ref2, atol=2e-2, rtol=2e-2), (loss2, ref2)

    # Case 3: ragged class tiling (C % block_cols != 0) -> column-mask path.
    N3, C3 = 16, 200
    logit3 = jax.random.normal(k1, (N3, C3), dtype=jnp.float32)
    target3 = jax.random.randint(k2, (N3,), 0, C3, dtype=jnp.int32)
    loss3 = jax.block_until_ready(
        label_smoothing_cross_entropy(logit3, target3, smoothing=0.1,
                                      block_rows=8, block_cols=128))
    ref3 = _reference(logit3, target3, smoothing=0.1)
    assert jnp.allclose(loss3, ref3, atol=1e-5, rtol=1e-5), (loss3, ref3)

    print("KERNEL_OK")
</pallas_src>

<mosaic_0001>
module attributes {stable_mosaic.version = 11 : i64} {
  func.func @_ls_ce_kernel(%arg0: i32, %arg1: i32, %arg2: memref<8x32xf32, #tpu.memory_space<vmem>>, %arg3: memref<8x1xi32, #tpu.memory_space<vmem>>, %arg4: memref<8x1xf32, #tpu.memory_space<vmem>>, %arg5: memref<8x1xf32, #tpu.memory_space<vmem>>, %arg6: memref<8x1xf32, #tpu.memory_space<vmem>>, %arg7: memref<8x1xf32, #tpu.memory_space<vmem>>) attributes {dimension_semantics = [#tpu.dimension_semantics<parallel>, #tpu.dimension_semantics<arbitrary>], iteration_bounds = array<i64: 2, 1>, scalar_prefetch = 0 : i64, scratch_operands = 3 : i64, tpu.core_type = #tpu.core_type<tc>, window_params = [{transform_indices = @transform_0, window_bounds = array<i64: 8, 32>}, {transform_indices = @transform_1, window_bounds = array<i64: 8, 1>}, {transform_indices = @transform_2, window_bounds = array<i64: 8, 1>}]} {
    %c0_i32 = arith.constant 0 : i32
    %0 = arith.cmpi eq, %arg1, %c0_i32 : i32
    %1 = arith.extui %0 : i1 to i32
    %c0_i32_0 = arith.constant 0 : i32
    %2 = arith.cmpi ne, %1, %c0_i32_0 : i32
    scf.if %2 {
      %cst_22 = arith.constant 0xFF800000 : f32
      %39 = vector.broadcast %cst_22 : f32 to vector<8x1xf32>
      %c0_23 = arith.constant 0 : index
      %c0_24 = arith.constant 0 : index
      %40 = vector.load %arg5[%c0_23, %c0_24] : memref<8x1xf32, #tpu.memory_space<vmem>>, vector<8x1xf32>
      tpu.vector_store %arg5[%c0_23, %c0_24], %39 {strides = array<i32>} : memref<8x1xf32, #tpu.memory_space<vmem>>, vector<8x1xf32>,
      %cst_25 = arith.constant 0.000000e+00 : f32
      %41 = vector.broadcast %cst_25 : f32 to vector<8x1xf32>
      %c0_26 = arith.constant 0 : index
      %c0_27 = arith.constant 0 : index
      %42 = vector.load %arg6[%c0_26, %c0_27] : memref<8x1xf32, #tpu.memory_space<vmem>>, vector<8x1xf32>
      tpu.vector_store %arg6[%c0_26, %c0_27], %41 {strides = array<i32>} : memref<8x1xf32, #tpu.memory_space<vmem>>, vector<8x1xf32>,
      %cst_28 = arith.constant 0.000000e+00 : f32
      %43 = vector.broadcast %cst_28 : f32 to vector<8x1xf32>
      %c0_29 = arith.constant 0 : index
      %c0_30 = arith.constant 0 : index
      %44 = vector.load %arg7[%c0_29, %c0_30] : memref<8x1xf32, #tpu.memory_space<vmem>>, vector<8x1xf32>
      tpu.vector_store %arg7[%c0_29, %c0_30], %43 {strides = array<i32>} : memref<8x1xf32, #tpu.memory_space<vmem>>, vector<8x1xf32>,
    } else {
    }
    %c0 = arith.constant 0 : index
    %c0_1 = arith.constant 0 : index
    %3 = vector.load %arg2[%c0, %c0_1] : memref<8x32xf32, #tpu.memory_space<vmem>>, vector<8x32xf32>
    %c0_2 = arith.constant 0 : index
    %c0_3 = arith.constant 0 : index
    %4 = vector.load %arg3[%c0_2, %c0_3] : memref<8x1xi32, #tpu.memory_space<vmem>>, vector<8x1xi32>
    %5 = tpu.iota {dimensions = array<i32: 1>} : vector<8x32xi32>
    %c32_i32 = arith.constant 32 : i32
    %6 = arith.muli %arg1, %c32_i32 : i32
    %7 = vector.broadcast %6 : i32 to vector<8x32xi32>
    %8 = arith.addi %5, %7 : vector<8x32xi32>
    %cst = arith.constant dense<0xFF800000> : vector<8xf32>
    %9 = vector.multi_reduction <maximumf>, %3, %cst [1] : vector<8x32xf32> to vector<8xf32>
    %10 = vector.shape_cast %9 : vector<8xf32> to vector<8x1xf32>
    %c0_4 = arith.constant 0 : index
    %c0_5 = arith.constant 0 : index
    %11 = vector.load %arg5[%c0_4, %c0_5] : memref<8x1xf32, #tpu.memory_space<vmem>>, vector<8x1xf32>
    %12 = arith.maximumf %11, %10 : vector<8x1xf32>
    %13 = vector.broadcast %12 : vector<8x1xf32> to vector<8x32xf32>
    %14 = arith.subf %3, %13 : vector<8x32xf32>
    %15 = math.exp %14 : vector<8x32xf32>
    %16 = vector.broadcast %4 : vector<8x1xi32> to vector<8x32xi32>
    %17 = arith.cmpi eq, %8, %16 : vector<8x32xi32>
    %cst_6 = arith.constant 0.903124988 : f32
    %cst_7 = arith.constant 3.125000e-03 : f32
    %18 = vector.broadcast %cst_6 : f32 to vector<8x32xf32>
    %19 = vector.broadcast %cst_7 : f32 to vector<8x32xf32>
    %20 = arith.select %17, %18, %19 : vector<8x32xi1>, vector<8x32xf32>
    %21 = arith.mulf %20, %3 : vector<8x32xf32>
    %22 = arith.subf %11, %12 : vector<8x1xf32>
    %23 = math.exp %22 : vector<8x1xf32>
    %c0_8 = arith.constant 0 : index
    %c0_9 = arith.constant 0 : index
    %24 = vector.load %arg6[%c0_8, %c0_9] : memref<8x1xf32, #tpu.memory_space<vmem>>, vector<8x1xf32>
    %25 = arith.mulf %24, %23 : vector<8x1xf32>
    %cst_10 = arith.constant dense<0.000000e+00> : vector<8xf32>
    %26 = vector.multi_reduction <add>, %15, %cst_10 [1] : vector<8x32xf32> to vector<8xf32>
    %27 = vector.shape_cast %26 : vector<8xf32> to vector<8x1xf32>
    %28 = arith.addf %25, %27 : vector<8x1xf32>
    %c0_11 = arith.constant 0 : index
    %c0_12 = arith.constant 0 : index
    %29 = vector.load %arg6[%c0_11, %c0_12] : memref<8x1xf32, #tpu.memory_space<vmem>>, vector<8x1xf32>
    tpu.vector_store %arg6[%c0_11, %c0_12], %28 {strides = array<i32>} : memref<8x1xf32, #tpu.memory_space<vmem>>, vector<8x1xf32>,
    %c0_13 = arith.constant 0 : index
    %c0_14 = arith.constant 0 : index
    %30 = vector.load %arg7[%c0_13, %c0_14] : memref<8x1xf32, #tpu.memory_space<vmem>>, vector<8x1xf32>
    %cst_15 = arith.constant dense<0.000000e+00> : vector<8xf32>
    %31 = vector.multi_reduction <add>, %21, %cst_15 [1] : vector<8x32xf32> to vector<8xf32>
    %32 = vector.shape_cast %31 : vector<8xf32> to vector<8x1xf32>
    %33 = arith.addf %30, %32 : vector<8x1xf32>
    %c0_16 = arith.constant 0 : index
    %c0_17 = arith.constant 0 : index
    %34 = vector.load %arg7[%c0_16, %c0_17] : memref<8x1xf32, #tpu.memory_space<vmem>>, vector<8x1xf32>
    tpu.vector_store %arg7[%c0_16, %c0_17], %33 {strides = array<i32>} : memref<8x1xf32, #tpu.memory_space<vmem>>, vector<8x1xf32>,
    %c0_18 = arith.constant 0 : index
    %c0_19 = arith.constant 0 : index
    %35 = vector.load %arg5[%c0_18, %c0_19] : memref<8x1xf32, #tpu.memory_space<vmem>>, vector<8x1xf32>
    tpu.vector_store %arg5[%c0_18, %c0_19], %12 {strides = array<i32>} : memref<8x1xf32, #tpu.memory_space<vmem>>, vector<8x1xf32>,
    %c0_i32_20 = arith.constant 0 : i32
    %36 = arith.cmpi eq, %arg1, %c0_i32_20 : i32
    %37 = arith.extui %36 : i1 to i32
    %c0_i32_21 = arith.constant 0 : i32
    %38 = arith.cmpi ne, %37, %c0_i32_21 : i32
    scf.if %38 {
      %c0_22 = arith.constant 0 : index
      %c0_23 = arith.constant 0 : index
      %39 = vector.load %arg5[%c0_22, %c0_23] : memref<8x1xf32, #tpu.memory_space<vmem>>, vector<8x1xf32>
      %c0_24 = arith.constant 0 : index
      %c0_25 = arith.constant 0 : index
      %40 = vector.load %arg6[%c0_24, %c0_25] : memref<8x1xf32, #tpu.memory_space<vmem>>, vector<8x1xf32>
      %41 = math.log %40 : vector<8x1xf32>
      %42 = arith.addf %39, %41 : vector<8x1xf32>
      %c0_26 = arith.constant 0 : index
      %c0_27 = arith.constant 0 : index
      %43 = vector.load %arg7[%c0_26, %c0_27] : memref<8x1xf32, #tpu.memory_space<vmem>>, vector<8x1xf32>
      %44 = arith.subf %42, %43 : vector<8x1xf32>
      %c0_28 = arith.constant 0 : index
      %c0_29 = arith.constant 0 : index
      %45 = vector.load %arg4[%c0_28, %c0_29] : memref<8x1xf32, #tpu.memory_space<vmem>>, vector<8x1xf32>
      tpu.vector_store %arg4[%c0_28, %c0_29], %44 {strides = array<i32>} : memref<8x1xf32, #tpu.memory_space<vmem>>, vector<8x1xf32>,
    } else {
    }
    return
  }
  func.func @transform_0(%arg0: i32, %arg1: i32) -> (i32, i32) {
    %c0_i32 = arith.constant 0 : i32
    return %arg0, %arg1 : i32, i32
  }
  func.func @transform_1(%arg0: i32, %arg1: i32) -> (i32, i32) {
    %c0_i32 = arith.constant 0 : i32
    %c0_i32_0 = arith.constant 0 : i32
    return %arg0, %c0_i32 : i32, i32
  }
  func.func @transform_2(%arg0: i32, %arg1: i32) -> (i32, i32) {
    %c0_i32 = arith.constant 0 : i32
    %c0_i32_0 = arith.constant 0 : i32
    return %arg0, %c0_i32 : i32, i32
  }
}

</mosaic_0001>

<bundles_post_ra>
// kernel: tpu_custom_call.1
= control target key start
LH: loop header
LB: loop body
LE: loop exit
PB: predicated region body
PF: predicated region fallthrough
CT: control target
= control target key end

     0   :  { %s408_s9 = smov 0   ;;  %s410_s10 = smov 0   ;;  %s459_s0 = inlined_call_operand.vmem [shape: f32[12,32], index: 0, kind: input, shape index: {}]   ;;  %s460_s1 = inlined_call_operand.vmem [shape: s32[12,1], index: 1, kind: input, shape index: {}]   ;;  %s461_s2 = inlined_call_operand.vmem [shape: f32[12,1], index: 2, kind: output, shape index: {}]  }
   0x1   :  { %s412_s11 = smov 0  }
   0x2 LB: > { %s24_s12 = sadd.s32 1, %s383_s10  ;;  %p323_p0 = scmp.ge.s32.totalorder %s387_s11, 1  ;;  %s387_s11 = sphi %s412_s11, %s12_s11   ;;  %s383_s10 = sphi %s410_s10, %s463_s10   ;;  %s379_s9 = sphi %s408_s9, %s462_s9  }
   0x3   : > { %p26_p1 = scmp.ge.s32.totalorder %s24_s12, 2  ;;  %p137_p2 = scmp.lt.s32.totalorder %s387_s11, 3 }
   0x5   : > { %s465_s12 = smov (%p26_p1, %s24_s12), 0  ;;  %p138_p3 = pnand %p323_p0, %p137_p2 }
   0x6   : > { %p164_p4 = scmp.lt.s32.totalorder (!%p138_p3), %s379_s9, 1 }
   0x7   : > { %141 = sbr.rel (%p138_p3) target bundleno = 469 (0x1d5), region = 28 }
   0xc   : > { %vm183_vm0 = vcmask 7168   ;;  %v389_v0 = vmov -inf   ;;  %s467_s9 = smov (!%p164_p4, %s379_s9), 1  ;;  %vm194_vm1 = vcmask 261120   ;;  %v390_v3 = vmov 0  }
   0xd   : > { %184 = vst.msk [vmem:[#allocation2] sm:$0xff] %vm183_vm0, %v389_v0  ;;  %s427_s13 = sshll.u32 %s467_s9, 3  ;;  %357 = vset.pattern.permute.xlu0 %v390_v3  ;;  %358 = vset.pattern.permute.xlu1 %v390_v3  ;;  %v391_v5 = vmov 0.0   ;;  %v189_v13 = vlaneseq  ;;  %v392_v16 = vmov 0.003125  }
   0xe   : > { %s170_s16 = scalar_lea.vmem %s459_s0, %s427_s13  ;;  %s174_s19 = scalar_lea.vmem %s460_s1, %s427_s13  ;;  %185 = vst.msk [vmem:[#allocation3] sm:$0xff] %vm183_vm0, %v391_v5  ;;  %186 = vst.msk [vmem:[#allocation4] sm:$0xff] %vm183_vm0, %v391_v5 }
   0xf   : > { %v187_v1 = vld [vmem:[%s170_s16] sm:$0xff]  ;;  %v190_v14 = vand.u32 127, %v189_v13  ;;  %s178_s22 = scalar_lea.vmem %s461_s2, %s427_s13 }
  0x10   : > { %v195_v2 = vsel %vm194_vm1, %v187_v1, -inf  ;;  %v188_v4 = vld [vmem:[%s174_s19] sm:$0xff] }
  0x11   : > { %196 = vmax.xlane.f32.xlu0 %v195_v2  ;;  %209 = vperm.xlu1 %358, %v188_v4  }
  0x14   : > { %v198_v6 = vld [vmem:[#allocation2] sm:$0xff] }
  0x15   : > { %v217_v24 = vld [vmem:[#allocation3] sm:$0xff]  ;;  %v225_v28 = vld [vmem:[#allocation4] sm:$0xff] }
  0x8c   : > { %v210_v15 = vpop.permute.xlu1 %209 }
  0x8d   : > { %vm211_vm2 = vcmp.eq.s32.totalorder %v190_v14, %v210_v15 }
  0x8e   : > { %v212_v17 = vsel %vm211_vm2, 0.903125, %v392_v16 }
  0x8f   : > { %v213_v18 = vmul.f32 %v212_v17, %v187_v1 }
  0x91   : > { %v226_v21 = vsel %vm194_vm1, %v213_v18, 0.0 }
  0x9a   : > { %v197_v7 = vpop.xlane.xlu0 %196 }
  0x9b   : > { %v199_v8 = vmax.f32 %v198_v6, %v197_v7 }
  0x9d   : > { %v214_v9 = vsub.f32 %v198_v6, %v199_v8  ;;  %231 = vst.msk [vmem:[#allocation2] sm:$0xff] %vm183_vm0, %v199_v8  ;;  %202 = vperm.xlu0 %357, %v199_v8  }
  0x9f   : > { %v215_v22 = vmul.f32 1.442695, %v214_v9 }
  0xa4   : > { %v235_v34 = vld [vmem:[#allocation2] sm:$0xff] }
 0x118   : > { %v203_v10 = vpop.permute.xlu0 %202 }
 0x119   : > { %v205_v11 = vsub.f32 %v187_v1, %v203_v10 }
 0x11b   : > { %v206_v12 = vmul.f32 1.442695, %v205_v11 }
 0x11d   : > { %359 = vpow2.f32 %v206_v12 }
 0x11e   : > { %361 = vpow2.f32 %v215_v22 }
 0x12a   : > { %v360_v19 = vpop.eup %359 }
 0x12b   : > { %v219_v20 = vsel %vm194_vm1, %v360_v19, 0.0  ;;  %v362_v23 = vpop.eup %361 }
 0x12c   : > { %220 = vadd.xlane.f32.xlu1 %v219_v20  ;;  %v218_v25 = vmul.f32 %v362_v23, %v217_v24 }
 0x130   : > { %227 = vadd.xlane.f32.xlu1 %v226_v21 }
 0x1b5   : > { %v221_v26 = vpop.xlane.xlu1 %220 }
 0x1b6   : > { %v222_v27 = vadd.f32 %v221_v26, %v218_v25 }
 0x1b8   : > { %224 = vst.msk [vmem:[#allocation3] sm:$0xff] %vm183_vm0, %v222_v27 }
 0x1b9   : > { %v228_v29 = vpop.xlane.xlu1 %227 }
 0x1ba   : > { %v229_v30 = vadd.f32 %v228_v29, %v225_v28 }
 0x1bc   : > { %230 = vst.msk [vmem:[#allocation4] sm:$0xff] %vm183_vm0, %v229_v30 }
 0x1bf   : > { %v236_v31 = vld [vmem:[#allocation3] sm:$0xff] }
 0x1c0   : > { %363 = vlog2.f32 %v236_v31 }
 0x1c3   : > { %v240_v35 = vld [vmem:[#allocation4] sm:$0xff] }
 0x1cd   : > { %v364_v32 = vpop.eup %363 }
 0x1ce   : > { %v238_v33 = vmul.f32 0.6931472, %v364_v32 }
 0x1d0   : > { %v239_v36 = vadd.f32 %v238_v33, %v235_v34 }
 0x1d2   : > { %v241_v37 = vsub.f32 %v239_v36, %v240_v35 }
 0x1d4   : > { %242 = vst.msk [vmem:[%s178_s22] sm:$0xff] %vm183_vm0, %v241_v37 }
 0x1d5 PF: > { %s12_s11 = sadd.s32 1, %s387_s11   ;;  %s462_s9 = smov %s383_s10 }
 0x1d6   : > { %p9_p5 = scmp.ge.s32.totalorder %s12_s11, 4   ;;  %s463_s10 = smov %s465_s12 }
 0x1d8   :  { %11 = sbr.rel (!%p9_p5) target bundleno = 2 (0x2), region = 69 }

</bundles_post_ra>
